<compile_context>
chip_gen: v6e
topology: v6e:2x2x1
jax: 0.10.0
libtpu: 0.0.40
codegen_flags: <defaults>
</compile_context>

<pallas_src>
import functools

import jax
import jax.numpy as jnp
from jax.experimental import pallas as pl
from jax.experimental.pallas import tpu as pltpu

_EPS = 1e-5     # BatchNorm eps
_TAU = 1.5      # LIFNode tau
_V_TH = 1.0     # LIFNode v_threshold, v_reset = 0.0 (hard reset)


def _round_up(x, m):
    return ((x + m - 1) // m) * m


# ---------------------------------------------------------------------------
# Pallas kernels
# ---------------------------------------------------------------------------
def _mm_bias_kernel(x_ref, w_ref, b_ref, o_ref):
    """o = x @ w + bias   (BN scale pre-folded into w; f32 accumulate)."""
    o_ref[...] = (jnp.dot(x_ref[...], w_ref[...],
                          preferred_element_type=jnp.float32) + b_ref[...])


def _mm_bias_res_kernel(x_ref, w_ref, b_ref, r_ref, o_ref):
    """o = x @ w + bias + residual."""
    o_ref[...] = (jnp.dot(x_ref[...], w_ref[...],
                          preferred_element_type=jnp.float32)
                  + b_ref[...] + r_ref[...])


def matmul_bias(x, w, bias, res=None, tm_max=512):
    """Tiled (over M) fused matmul + bias (+ residual). bf16 operands, f32 out."""
    m, k = x.shape
    n = w.shape[1]
    m16 = _round_up(m, 16)              # 16: bf16 sublane packing
    tm = min(tm_max, m16)
    m_pad = _round_up(m16, tm)
    x = x.astype(jnp.bfloat16)
    w = w.astype(jnp.bfloat16)
    bias = bias.reshape(1, n).astype(jnp.float32)
    if m_pad != m:
        x = jnp.pad(x, ((0, m_pad - m), (0, 0)))
    grid = (m_pad // tm,)
    x_spec = pl.BlockSpec((tm, k), lambda i: (i, 0))
    w_spec = pl.BlockSpec((k, n), lambda i: (0, 0))      # resident across grid
    b_spec = pl.BlockSpec((1, n), lambda i: (0, 0))
    o_spec = pl.BlockSpec((tm, n), lambda i: (i, 0))
    cp = pltpu.CompilerParams(dimension_semantics=("parallel",))
    if res is None:
        out = pl.pallas_call(
            _mm_bias_kernel,
            out_shape=jax.ShapeDtypeStruct((m_pad, n), jnp.float32),
            grid=grid, in_specs=[x_spec, w_spec, b_spec], out_specs=o_spec,
            compiler_params=cp,
        )(x, w, bias)
    else:
        res = res.astype(jnp.float32)
        if m_pad != m:
            res = jnp.pad(res, ((0, m_pad - m), (0, 0)))
        r_spec = pl.BlockSpec((tm, n), lambda i: (i, 0))
        out = pl.pallas_call(
            _mm_bias_res_kernel,
            out_shape=jax.ShapeDtypeStruct((m_pad, n), jnp.float32),
            grid=grid, in_specs=[x_spec, w_spec, b_spec, r_spec],
            out_specs=o_spec, compiler_params=cp,
        )(x, w, bias, res)
    return out[:m] if m_pad != m else out


def _lif_kernel(x_ref, s_ref, *, tau, v_th):
    """Multi-step LIF: v += (x - v)/tau; spike = (v >= v_th); hard reset to 0."""
    t_steps = x_ref.shape[0]
    v = jnp.zeros(x_ref.shape[1:], jnp.float32)
    inv_tau = 1.0 / tau
    for t in range(t_steps):                  # T small & static -> unrolled
        h = v + (x_ref[t] - v) * inv_tau
        spike = (h >= v_th).astype(jnp.float32)
        s_ref[t] = spike.astype(s_ref.dtype)
        v = h * (1.0 - spike)


def lif(x5):
    """Lane-dense, row-tiled LIF over (T, ...). Returns bf16 spikes (0/1)."""
    t = x5.shape[0]
    n = x5.size // t
    lane = 128
    r = -(-n // lane)
    r_pad = _round_up(r, 16)
    tr = min(512, r_pad)
    r_pad = _round_up(r_pad, tr)
    n_pad = r_pad * lane
    flat = x5.reshape(t, n).astype(jnp.float32)
    if n_pad != n:
        flat = jnp.pad(flat, ((0, 0), (0, n_pad - n)))
    xr = flat.reshape(t, r_pad, lane)
    spikes = pl.pallas_call(
        functools.partial(_lif_kernel, tau=_TAU, v_th=_V_TH),
        out_shape=jax.ShapeDtypeStruct((t, r_pad, lane), jnp.bfloat16),
        grid=(r_pad // tr,),
        in_specs=[pl.BlockSpec((t, tr, lane), lambda i: (0, i, 0))],
        out_specs=pl.BlockSpec((t, tr, lane), lambda i: (0, i, 0)),
        compiler_params=pltpu.CompilerParams(dimension_semantics=("parallel",)),
    )(xr)
    return spikes.reshape(t, n_pad)[:, :n].reshape(x5.shape)


def _maxpool3x3s2_kernel(x_ref, o_ref):
    """3x3 max at stride-2 positions, fused (no full-res intermediate).

    x_ref: (Hp, Wp, tn, C) padded with -inf, pooled dims lead (no relayouts);
    o_ref: (Ho, Wo, tn, C). Only unit-stride slices + leading-dim reshapes.
    """
    ho, wo, tn, c = o_ref.shape
    wp = x_ref.shape[1]
    x = x_ref[...]
    # pool along H at stride 2: rows {2i, 2i+1, 2i+2}
    a = x[:2 * ho].reshape(ho, 2 * wp, tn, c)
    r = jnp.maximum(a[:, :wp], a[:, wp:])                         # 2i vs 2i+1
    b = x[2:2 * ho + 2].reshape(ho, 2 * wp, tn, c)[:, :wp]        # 2i+2
    r = jnp.maximum(r, b)                                         # (ho, Wp, tn, C)
    # pool along W at stride 2: cols {2j, 2j+1, 2j+2}
    cv = r[:, :2 * wo].reshape(ho * wo, 2, tn, c)
    s = jnp.maximum(cv[:, 0], cv[:, 1])                           # 2j vs 2j+1
    d = r[:, 2:2 * wo + 2].reshape(ho * wo, 2, tn, c)[:, 0]       # 2j+2
    o_ref[...] = jnp.maximum(s, d).reshape(ho, wo, tn, c)


def maxpool_3x3_s2_p1(x5):
    t, b, h, w, c = x5.shape
    n = t * b
    ho = (h - 1) // 2 + 1
    wo = (w - 1) // 2 + 1
    hp = max(h + 2, 2 * ho + 2)
    wp = max(w + 2, 2 * wo + 2)
    x = x5.reshape(n, h, w, c).astype(jnp.float32)
    xp = jnp.pad(x, ((0, 0), (1, hp - h - 1), (1, wp - w - 1), (0, 0)),
                 constant_values=-jnp.inf)
    xt = jnp.transpose(xp, (1, 2, 0, 3))          # (Hp, Wp, N, C) layout glue
    tn = 8 if (n % 8 == 0) else n
    out = pl.pallas_call(
        _maxpool3x3s2_kernel,
        out_shape=jax.ShapeDtypeStruct((ho, wo, n, c), jnp.float32),
        grid=(n // tn,),
        in_specs=[pl.BlockSpec((hp, wp, tn, c), lambda i: (0, 0, i, 0))],
        out_specs=pl.BlockSpec((ho, wo, tn, c), lambda i: (0, 0, i, 0)),
        compiler_params=pltpu.CompilerParams(dimension_semantics=("parallel",)),
    )(xt)
    return jnp.transpose(out, (2, 0, 1, 3)).reshape(t, b, ho, wo, c)


# ---------------------------------------------------------------------------
# Conv / BN wrappers (im2col glue in JAX, tiled matmul in Pallas)
# ---------------------------------------------------------------------------
def _bn_scale_bias(bn):
    gamma, beta, mean, var = bn                   # eval-mode BatchNorm2d
    scale = gamma / jnp.sqrt(var + _EPS)
    bias = beta - mean * scale
    return scale, bias


def conv3x3_bn(x5, w, bn, stride, residual=None):
    # x5: (T,B,H,W,Cin); w: PyTorch layout (Cout,Cin,3,3); padding=1, no bias.
    t, b, h, wd, cin = x5.shape
    cout = w.shape[0]
    n = t * b
    # TODO(synk): tap-accumulation grid axis would avoid the 9x im2col HBM copy.
    x = x5.reshape(n, h, wd, cin).astype(jnp.bfloat16)   # bf16 halves patch bytes
    ho = (h + 2 - 3) // stride + 1
    wo = (wd + 2 - 3) // stride + 1
    xp = jnp.pad(x, ((0, 0), (1, 1), (1, 1), (0, 0)))
    cols = []
    for dh in range(3):
        for dw in range(3):
            cols.append(xp[:, dh:dh + stride * (ho - 1) + 1:stride,
                            dw:dw + stride * (wo - 1) + 1:stride, :])
    patches = jnp.concatenate(cols, axis=-1).reshape(n * ho * wo, 9 * cin)
    w_mat = jnp.transpose(w, (2, 3, 1, 0)).reshape(9 * cin, cout)
    scale, bias = _bn_scale_bias(bn)
    w_mat = w_mat * scale[None, :]                # fold BN scale into weights
    res = None if residual is None else residual.reshape(n * ho * wo, cout)
    out = matmul_bias(patches, w_mat, bias, res)
    return out.reshape(t, b, ho, wo, cout)


def conv1x1_bn(x5, w, bn, stride):
    t, b, h, wd, cin = x5.shape
    cout = w.shape[0]
    xs = x5[:, :, ::stride, ::stride, :]
    ho, wo = xs.shape[2], xs.shape[3]
    x = xs.reshape(t * b * ho * wo, cin)
    w_mat = jnp.transpose(w.reshape(cout, cin), (1, 0))
    scale, bias = _bn_scale_bias(bn)
    w_mat = w_mat * scale[None, :]
    out = matmul_bias(x, w_mat, bias, None)
    return out.reshape(t, b, ho, wo, cout)


# ---------------------------------------------------------------------------
# MS-ResNet blocks and forward pass
# ---------------------------------------------------------------------------
# TODO(synk): the `block` class body is not in the reference; the standard
# MS-ResNet membrane-shortcut BasicBlock (expansion=1) is assumed:
#   out = conv2_bn(sn2(conv1_bn(sn1(x)))) + (downsample(x) if downsample else x)
# matching the downsample = Sequential(LIFNode, conv1x1+BN) built in _make_layer.
def ms_basic_block(x, p):
    out = lif(x)                                                    # sn1
    out = conv3x3_bn(out, p['w1'], p['bn1'], stride=p['stride'])
    out = lif(out)                                                  # sn2
    if p['down_w'] is not None:
        ident = lif(x)                                              # downsample LIF
        ident = conv1x1_bn(ident, p['down_w'], p['down_bn'], stride=p['stride'])
    else:
        ident = x
    # second conv + bn with the residual add fused into the Pallas kernel
    out = conv3x3_bn(out, p['w2'], p['bn2'], stride=1, residual=ident)
    return out


def msresnet_forward(params, x):
    # x: (B, T, 2, H, W) as in PyTorch; permute(1,0,2,3,4) -> (T,B,2,H,W)
    x = jnp.transpose(x, (1, 0, 3, 4, 2)).astype(jnp.float32)       # (T,B,H,W,C)
    x = conv3x3_bn(x, params['conv1_w'], params['bn1'], stride=2)   # conv1 + bn1
    x = maxpool_3x3_s2_p1(x)                                        # MaxPool2d(3,2,1)
    for stage in params['stages']:                                  # layer1..layer3
        for blk in stage:
            x = ms_basic_block(x, blk)
    x = lif(x)                                                      # sn1 (after layer3)
    x = jnp.mean(x.astype(jnp.float32), axis=(2, 3))                # AdaptiveAvgPool+flatten
    t, b, c = x.shape
    y = matmul_bias(                                                # fc (nn.Linear)
        x.reshape(t * b, c),
        jnp.transpose(params['fc_w'], (1, 0)),
        params['fc_b'],
        None,
    ).reshape(t, b, -1)
    return jnp.mean(y, axis=0)                                      # mean over time dim


# ---------------------------------------------------------------------------
# Deterministic parameter initialization (matches the module's __init__ shapes)
# ---------------------------------------------------------------------------
def _bn_params(c):
    # BatchNorm2d: weight=1, bias=0 (per init); running_mean=0, running_var=1
    return (jnp.ones((c,), jnp.float32), jnp.zeros((c,), jnp.float32),
            jnp.zeros((c,), jnp.float32), jnp.ones((c,), jnp.float32))


def _kaiming_conv(key, cout, cin, k):
    fan_out = cout * k * k
    std = (2.0 / fan_out) ** 0.5
    return std * jax.random.normal(key, (cout, cin, k, k), jnp.float32)


def make_params(key, layers=(1, 1, 1), num_classes=10):
    keys = iter(jax.random.split(key, 64))
    params = {}
    inplanes = 16
    params['conv1_w'] = _kaiming_conv(next(keys), inplanes, 2, 3)   # Conv2d(2,16,3,s2,p1)
    params['bn1'] = _bn_params(inplanes)
    stages = []
    for planes, n_blocks, stride in zip((16, 32, 64), layers, (1, 2, 2)):
        blocks = []
        for i in range(n_blocks):
            s = stride if i == 0 else 1
            need_down = (s != 1) or (inplanes != planes)
            blk = {
                'stride': s,
                'w1': _kaiming_conv(next(keys), planes, inplanes, 3),
                'bn1': _bn_params(planes),
                'w2': _kaiming_conv(next(keys), planes, planes, 3),
                'bn2': _bn_params(planes),
                'down_w': _kaiming_conv(next(keys), planes, inplanes, 1) if need_down else None,
                'down_bn': _bn_params(planes) if need_down else None,
            }
            blocks.append(blk)
            inplanes = planes
        stages.append(blocks)
    params['stages'] = stages
    params['fc_w'] = 0.1 * jax.random.normal(next(keys), (num_classes, 64), jnp.float32)
    params['fc_b'] = jnp.zeros((num_classes,), jnp.float32)
    return params


if __name__ == "__main__":
    key = jax.random.PRNGKey(0)
    k_param, k_x = jax.random.split(key)
    B, T, H, W = 2, 4, 16, 16
    params = make_params(k_param, layers=(1, 1, 1), num_classes=10)
    # DVS-style input: (B, T, 2 polarity channels, H, W)
    x = jax.random.uniform(k_x, (B, T, 2, H, W), jnp.float32)
    y = msresnet_forward(params, x)
    jax.block_until_ready(y)
    assert y.shape == (B, 10), y.shape
    print("KERNEL_OK")
</pallas_src>

<mosaic_0001>
module attributes {stable_mosaic.version = 11 : i64} {
  func.func @_mm_bias_kernel(%arg0: i32, %arg1: memref<512x18xbf16, #tpu.memory_space<vmem>>, %arg2: memref<18x16xbf16, #tpu.memory_space<vmem>>, %arg3: memref<1x16xf32, #tpu.memory_space<vmem>>, %arg4: memref<512x16xf32, #tpu.memory_space<vmem>>) attributes {dimension_semantics = [#tpu.dimension_semantics<parallel>], iteration_bounds = array<i64: 1>, scalar_prefetch = 0 : i64, scratch_operands = 0 : i64, tpu.core_type = #tpu.core_type<tc>, window_params = [{transform_indices = @transform_0, window_bounds = array<i64: 512, 18>}, {pipeline_mode = #tpu.pipeline_mode<synchronous>, transform_indices = @transform_1, window_bounds = array<i64: 18, 16>}, {pipeline_mode = #tpu.pipeline_mode<synchronous>, transform_indices = @transform_2, window_bounds = array<i64: 1, 16>}, {transform_indices = @transform_3, window_bounds = array<i64: 512, 16>}]} {
    %c0 = arith.constant 0 : index
    %c0_0 = arith.constant 0 : index
    %0 = vector.load %arg1[%c0, %c0_0] : memref<512x18xbf16, #tpu.memory_space<vmem>>, vector<512x18xbf16>
    %c0_1 = arith.constant 0 : index
    %c0_2 = arith.constant 0 : index
    %1 = vector.load %arg2[%c0_1, %c0_2] : memref<18x16xbf16, #tpu.memory_space<vmem>>, vector<18x16xbf16>
    %cst = arith.constant dense<0.000000e+00> : vector<512x16xf32>
    %2 = tpu.matmul %0, %1, %cst {dimension_numbers = #tpu.dot_dimension_numbers<[1], [0], [0], [1], [0, 0, 1, 1], [], []>} : vector<512x18xbf16>, vector<18x16xbf16>, vector<512x16xf32> -> vector<512x16xf32>
    %c0_3 = arith.constant 0 : index
    %c0_4 = arith.constant 0 : index
    %3 = vector.load %arg3[%c0_3, %c0_4] : memref<1x16xf32, #tpu.memory_space<vmem>>, vector<1x16xf32>
    %4 = vector.broadcast %3 : vector<1x16xf32> to vector<512x16xf32>
    %5 = arith.addf %2, %4 : vector<512x16xf32>
    %c0_5 = arith.constant 0 : index
    %c0_6 = arith.constant 0 : index
    %6 = vector.load %arg4[%c0_5, %c0_6] : memref<512x16xf32, #tpu.memory_space<vmem>>, vector<512x16xf32>
    tpu.vector_store %arg4[%c0_5, %c0_6], %5 {strides = array<i32>} : memref<512x16xf32, #tpu.memory_space<vmem>>, vector<512x16xf32>,
    return
  }
  func.func @transform_0(%arg0: i32) -> (i32, i32) {
    %c0_i32 = arith.constant 0 : i32
    %c0_i32_0 = arith.constant 0 : i32
    return %arg0, %c0_i32 : i32, i32
  }
  func.func @transform_1(%arg0: i32) -> (i32, i32) {
    %c0_i32 = arith.constant 0 : i32
    %c0_i32_0 = arith.constant 0 : i32
    %c0_i32_1 = arith.constant 0 : i32
    return %c0_i32, %c0_i32_0 : i32, i32
  }
  func.func @transform_2(%arg0: i32) -> (i32, i32) {
    %c0_i32 = arith.constant 0 : i32
    %c0_i32_0 = arith.constant 0 : i32
    %c0_i32_1 = arith.constant 0 : i32
    return %c0_i32, %c0_i32_0 : i32, i32
  }
  func.func @transform_3(%arg0: i32) -> (i32, i32) {
    %c0_i32 = arith.constant 0 : i32
    %c0_i32_0 = arith.constant 0 : i32
    return %arg0, %c0_i32 : i32, i32
  }
}

</mosaic_0001>

<bundles_post_ra>
// kernel: tpu_custom_call.1
= control target key start
LH: loop header
LB: loop body
LE: loop exit
PB: predicated region body
PF: predicated region fallthrough
CT: control target
= control target key end

     0   :  { %vm355_vm0 = vcmask 1040384   ;;  %vm258_vm1 = vcmask 146432   ;;  %vm648_vm2 = vcmask 130048   ;;  %s1405_s1 = inlined_call_operand.vmem [shape: bf16[18,16], index: 1, kind: input, shape index: {}]   ;;  %s1406_s0 = inlined_call_operand.vmem [shape: bf16[512,18], index: 0, kind: input, shape index: {}]   ;;  %s1407_s2 = inlined_call_operand.vmem [shape: f32[1,16], index: 2, kind: input, shape index: {}]   ;;  %s1408_s3 = inlined_call_operand.vmem [shape: f32[512,16], index: 3, kind: output, shape index: {}]  }
   0x1   :  { %v892_v0 = vld [vmem:[%s1405_s1 + $0x8] ss:$0 sps:$4 sm:$0x11]   ;;  %v893_v1 = vld [vmem:[%s1405_s1] sm:$0xff]   ;;  %v898_v7 = vld [vmem:[%s1406_s0 + $0x10] sm:$0xff]  }
   0x2   :  { %890 = vmatprep.subr.msk.bf16.mxu0 %vm355_vm0, %v892_v0  ;;  %891 = vmatprep.subr.msk.bf16.mxu1 %vm355_vm0, %v892_v0  ;;  %v357_v2 = vsel %vm355_vm0, %v892_v0, 0  ;;  %v894_v3 = vld [vmem:[%s1406_s0] sm:$0xff]   ;;  %v896_v5 = vld [vmem:[%s1406_s0 + $0x8] sm:$0xff]   ;;  %v899_v8 = vld [vmem:[%s1406_s0 + $0x90] sm:$0xff]  }
   0x3   :  { %819 = vmatpush3.bf16.msra.mxu0 %v357_v2  ;;  %888 = vmatpush3.bf16.msra.mxu1 %v357_v2  ;;  %v895_v4 = vld [vmem:[%s1406_s0 + $0x80] sm:$0xff]   ;;  %v897_v6 = vld [vmem:[%s1406_s0 + $0x88] sm:$0xff]   ;;  %v900_v9 = vld [vmem:[%s1406_s0 + $0x18] sm:$0xff]  }
   0x4   :  { %820 = vmatprep.subr.bf16.mxu0 %v893_v1  ;;  %887 = vmatprep.subr.bf16.mxu1 %v893_v1  ;;  %v901_v10 = vld [vmem:[%s1406_s0 + $0x98] sm:$0xff]   ;;  %v902_v11 = vld [vmem:[%s1406_s0 + $0x20] sm:$0xff]   ;;  %v904_v13 = vld [vmem:[%s1406_s0 + $0x28] sm:$0xff]  }
   0x5   :  { %822 = vmatprep.mubr.msk.bf16.mxu0 %vm258_vm1, %v894_v3  ;;  %854 = vmatprep.mubr.msk.bf16.mxu1 %vm258_vm1, %v895_v4  ;;  %v903_v12 = vld [vmem:[%s1406_s0 + $0xa0] sm:$0xff]   ;;  %v905_v14 = vld [vmem:[%s1406_s0 + $0xa8] sm:$0xff]   ;;  %v906_v15 = vld [vmem:[%s1406_s0 + $0x30] sm:$0xff]  }
   0x6   :  { %v907_v16 = vld [vmem:[%s1406_s0 + $0xb0] sm:$0xff]   ;;  %v908_v17 = vld [vmem:[%s1406_s0 + $0x38] sm:$0xff]   ;;  %v910_v19 = vld [vmem:[%s1406_s0 + $0x40] sm:$0xff]  }
   0x7   :  { %821 = vmatpush3.bf16.msra.mxu0 %v893_v1  ;;  %889 = vmatpush3.bf16.msra.mxu1 %v893_v1  ;;  %v909_v18 = vld [vmem:[%s1406_s0 + $0xb8] sm:$0xff]   ;;  %v911_v20 = vld [vmem:[%s1406_s0 + $0xc0] sm:$0xff]   ;;  %v912_v21 = vld [vmem:[%s1406_s0 + $0x48] sm:$0xff]  }
   0x8   :  { %v913_v22 = vld [vmem:[%s1406_s0 + $0xc8] sm:$0xff]   ;;  %v914_v23 = vld [vmem:[%s1406_s0 + $0x50] sm:$0xff]   ;;  %v916_v25 = vld [vmem:[%s1406_s0 + $0x58] sm:$0xff]  }
   0x9   :  { %v915_v24 = vld [vmem:[%s1406_s0 + $0xd0] sm:$0xff]   ;;  %v917_v26 = vld [vmem:[%s1406_s0 + $0xd8] sm:$0xff]   ;;  %v918_v27 = vld [vmem:[%s1406_s0 + $0x60] sm:$0xff]  }
   0xa   :  { %823 = vmatmul.mubr.msk.bf16.vlgmr.msra.gmra.mxu0 %vm258_vm1, %v896_v5  ;;  %855 = vmatmul.mubr.msk.bf16.vlgmr.msra.gmra.mxu1 %vm258_vm1, %v897_v6  ;;  %v919_v28 = vld [vmem:[%s1406_s0 + $0xe0] sm:$0xff]   ;;  %v920_v29 = vld [vmem:[%s1406_s0 + $0x68] sm:$0xff]   ;;  %v922_v31 = vld [vmem:[%s1406_s0 + $0x70] sm:$0xff]  }
   0xb   :  { %826 = vmatprep.mubr.msk.bf16.mxu0 %vm258_vm1, %v898_v7  ;;  %858 = vmatprep.mubr.msk.bf16.mxu1 %vm258_vm1, %v899_v8  ;;  %v921_v30 = vld [vmem:[%s1406_s0 + $0xe8] sm:$0xff]   ;;  %v923_v32 = vld [vmem:[%s1406_s0 + $0xf0] sm:$0xff]   ;;  %v924_v33 = vld [vmem:[%s1406_s0 + $0x78] sm:$0xff]  }
   0xc   :  { %v925_v34 = vld [vmem:[%s1406_s0 + $0xf8] sm:$0xff]   ;;  %v1083_v35 = vld [vmem:[%s1407_s2] ss:$0 sm:$0xff] }
  0x12   :  { %827 = vmatmul.mubr.msk.bf16.gmra.mxu0 %vm258_vm1, %v900_v9  ;;  %859 = vmatmul.mubr.msk.bf16.gmra.mxu1 %vm258_vm1, %v901_v10 }
  0x13   :  { %830 = vmatprep.mubr.msk.bf16.mxu0 %vm258_vm1, %v902_v11  ;;  %862 = vmatprep.mubr.msk.bf16.mxu1 %vm258_vm1, %v903_v12 }
  0x1a   :  { %831 = vmatmul.mubr.msk.bf16.gmra.mxu0 %vm258_vm1, %v904_v13  ;;  %863 = vmatmul.mubr.msk.bf16.gmra.mxu1 %vm258_vm1, %v905_v14 }
  0x1b   :  { %834 = vmatprep.mubr.msk.bf16.mxu0 %vm258_vm1, %v906_v15  ;;  %866 = vmatprep.mubr.msk.bf16.mxu1 %vm258_vm1, %v907_v16 }
  0x22   :  { %835 = vmatmul.mubr.msk.bf16.gmra.mxu0 %vm258_vm1, %v908_v17  ;;  %867 = vmatmul.mubr.msk.bf16.gmra.mxu1 %vm258_vm1, %v909_v18 }
  0x23   :  { %838 = vmatprep.mubr.msk.bf16.mxu0 %vm258_vm1, %v910_v19  ;;  %870 = vmatprep.mubr.msk.bf16.mxu1 %vm258_vm1, %v911_v20 }
  0x2a   :  { %839 = vmatmul.mubr.msk.bf16.gmra.mxu0 %vm258_vm1, %v912_v21  ;;  %871 = vmatmul.mubr.msk.bf16.gmra.mxu1 %vm258_vm1, %v913_v22 }
  0x2b   :  { %842 = vmatprep.mubr.msk.bf16.mxu0 %vm258_vm1, %v914_v23  ;;  %874 = vmatprep.mubr.msk.bf16.mxu1 %vm258_vm1, %v915_v24 }
  0x32   :  { %843 = vmatmul.mubr.msk.bf16.gmra.mxu0 %vm258_vm1, %v916_v25  ;;  %875 = vmatmul.mubr.msk.bf16.gmra.mxu1 %vm258_vm1, %v917_v26 }
  0x33   :  { %846 = vmatprep.mubr.msk.bf16.mxu0 %vm258_vm1, %v918_v27  ;;  %878 = vmatprep.mubr.msk.bf16.mxu1 %vm258_vm1, %v919_v28 }
  0x3a   :  { %847 = vmatmul.mubr.msk.bf16.gmra.mxu0 %vm258_vm1, %v920_v29  ;;  %879 = vmatmul.mubr.msk.bf16.gmra.mxu1 %vm258_vm1, %v921_v30 }
  0x3b   :  { %850 = vmatprep.mubr.msk.bf16.mxu0 %vm258_vm1, %v922_v31  ;;  %882 = vmatprep.mubr.msk.bf16.mxu1 %vm258_vm1, %v923_v32 }
  0x42   :  { %851 = vmatmul.mubr.msk.bf16.gmra.mxu0 %vm258_vm1, %v924_v33  ;;  %883 = vmatmul.mubr.msk.bf16.gmra.mxu1 %vm258_vm1, %v925_v34 }
  0xca   :  { %v824_v36 = vpop.f32.mrf.mxu0  ;;  %v856_v37 = vpop.f32.mrf.mxu1 }
  0xcb   :  { %v402_v38 = vadd.f32 %v824_v36, %v1083_v35  ;;  %v530_v39 = vadd.f32 %v856_v37, %v1083_v35 }
  0xcc   :  { %v393_v40 = vpop.f32.mrf.mxu0  ;;  %v521_v41 = vpop.f32.mrf.mxu1 }
  0xcd   :  { %651 = vst.msk [vmem:[%s1408_s3 + $0x10] sm:$0xff] %vm648_vm2, %v402_v38  ;;  %683 = vst.msk [vmem:[%s1408_s3 + $0x110] sm:$0xff] %vm648_vm2, %v530_v39  ;;  %v394_v42 = vadd.f32 %v1083_v35, %v393_v40  ;;  %v522_v43 = vadd.f32 %v1083_v35, %v521_v41 }
  0xce   :  { %v825_v44 = vpop.f32.mrf.mxu0  ;;  %v857_v45 = vpop.f32.mrf.mxu1 }
  0xcf   :  { %649 = vst.msk [vmem:[%s1408_s3] sm:$0xff] %vm648_vm2, %v394_v42  ;;  %681 = vst.msk [vmem:[%s1408_s3 + $0x100] sm:$0xff] %vm648_vm2, %v522_v43  ;;  %v405_v46 = vadd.f32 %v825_v44, %v1083_v35  ;;  %v533_v47 = vadd.f32 %v857_v45, %v1083_v35 }
  0xd0   :  { %v396_v48 = vpop.f32.mrf.mxu0  ;;  %v524_v49 = vpop.f32.mrf.mxu1 }
  0xd1   :  { %652 = vst.msk [vmem:[%s1408_s3 + $0x18] sm:$0xff] %vm648_vm2, %v405_v46  ;;  %684 = vst.msk [vmem:[%s1408_s3 + $0x118] sm:$0xff] %vm648_vm2, %v533_v47  ;;  %v397_v50 = vadd.f32 %v1083_v35, %v396_v48  ;;  %v525_v51 = vadd.f32 %v1083_v35, %v524_v49 }
  0xd2   :  { %v828_v52 = vpop.f32.mrf.mxu0  ;;  %v860_v53 = vpop.f32.mrf.mxu1 }
  0xd3   :  { %650 = vst.msk [vmem:[%s1408_s3 + $0x8] sm:$0xff] %vm648_vm2, %v397_v50  ;;  %682 = vst.msk [vmem:[%s1408_s3 + $0x108] sm:$0xff] %vm648_vm2, %v525_v51  ;;  %v418_v54 = vadd.f32 %v828_v52, %v1083_v35  ;;  %v546_v55 = vadd.f32 %v860_v53, %v1083_v35 }
  0xd4   :  { %v409_v56 = vpop.f32.mrf.mxu0  ;;  %v537_v57 = vpop.f32.mrf.mxu1 }
  0xd5   :  { %655 = vst.msk [vmem:[%s1408_s3 + $0x30] sm:$0xff] %vm648_vm2, %v418_v54  ;;  %687 = vst.msk [vmem:[%s1408_s3 + $0x130] sm:$0xff] %vm648_vm2, %v546_v55  ;;  %v410_v58 = vadd.f32 %v1083_v35, %v409_v56  ;;  %v538_v59 = vadd.f32 %v1083_v35, %v537_v57 }
  0xd6   :  { %v829_v60 = vpop.f32.mrf.mxu0  ;;  %v861_v61 = vpop.f32.mrf.mxu1 }
  0xd7   :  { %653 = vst.msk [vmem:[%s1408_s3 + $0x20] sm:$0xff] %vm648_vm2, %v410_v58  ;;  %685 = vst.msk [vmem:[%s1408_s3 + $0x120] sm:$0xff] %vm648_vm2, %v538_v59  ;;  %v421_v62 = vadd.f32 %v829_v60, %v1083_v35  ;;  %v549_v63 = vadd.f32 %v861_v61, %v1083_v35 }
  0xd8   :  { %v412_v0 = vpop.f32.mrf.mxu0  ;;  %v540_v1 = vpop.f32.mrf.mxu1 }
  0xd9   :  { %656 = vst.msk [vmem:[%s1408_s3 + $0x38] sm:$0xff] %vm648_vm2, %v421_v62  ;;  %688 = vst.msk [vmem:[%s1408_s3 + $0x138] sm:$0xff] %vm648_vm2, %v549_v63  ;;  %v413_v2 = vadd.f32 %v1083_v35, %v412_v0  ;;  %v541_v3 = vadd.f32 %v1083_v35, %v540_v1 }
  0xda   :  { %v832_v4 = vpop.f32.mrf.mxu0  ;;  %v864_v5 = vpop.f32.mrf.mxu1 }
  0xdb   :  { %654 = vst.msk [vmem:[%s1408_s3 + $0x28] sm:$0xff] %vm648_vm2, %v413_v2  ;;  %686 = vst.msk [vmem:[%s1408_s3 + $0x128] sm:$0xff] %vm648_vm2, %v541_v3  ;;  %v434_v6 = vadd.f32 %v832_v4, %v1083_v35  ;;  %v562_v7 = vadd.f32 %v864_v5, %v1083_v35 }
  0xdc   :  { %v425_v8 = vpop.f32.mrf.mxu0  ;;  %v553_v9 = vpop.f32.mrf.mxu1 }
  0xdd   :  { %659 = vst.msk [vmem:[%s1408_s3 + $0x50] sm:$0xff] %vm648_vm2, %v434_v6  ;;  %691 = vst.msk [vmem:[%s1408_s3 + $0x150] sm:$0xff] %vm648_vm2, %v562_v7  ;;  %v426_v10 = vadd.f32 %v1083_v35, %v425_v8  ;;  %v554_v11 = vadd.f32 %v1083_v35, %v553_v9 }
  0xde   :  { %v833_v12 = vpop.f32.mrf.mxu0  ;;  %v865_v13 = vpop.f32.mrf.mxu1 }
  0xdf   :  { %657 = vst.msk [vmem:[%s1408_s3 + $0x40] sm:$0xff] %vm648_vm2, %v426_v10  ;;  %689 = vst.msk [vmem:[%s1408_s3 + $0x140] sm:$0xff] %vm648_vm2, %v554_v11  ;;  %v437_v14 = vadd.f32 %v833_v12, %v1083_v35  ;;  %v565_v15 = vadd.f32 %v865_v13, %v1083_v35 }
  0xe0   :  { %v428_v16 = vpop.f32.mrf.mxu0  ;;  %v556_v17 = vpop.f32.mrf.mxu1 }
  0xe1   :  { %660 = vst.msk [vmem:[%s1408_s3 + $0x58] sm:$0xff] %vm648_vm2, %v437_v14  ;;  %692 = vst.msk [vmem:[%s1408_s3 + $0x158] sm:$0xff] %vm648_vm2, %v565_v15  ;;  %v429_v18 = vadd.f32 %v1083_v35, %v428_v16  ;;  %v557_v19 = vadd.f32 %v1083_v35, %v556_v17 }
  0xe2   :  { %v836_v20 = vpop.f32.mrf.mxu0  ;;  %v868_v21 = vpop.f32.mrf.mxu1 }
  0xe3   :  { %658 = vst.msk [vmem:[%s1408_s3 + $0x48] sm:$0xff] %vm648_vm2, %v429_v18  ;;  %690 = vst.msk [vmem:[%s1408_s3 + $0x148] sm:$0xff] %vm648_vm2, %v557_v19  ;;  %v450_v22 = vadd.f32 %v836_v20, %v1083_v35  ;;  %v578_v23 = vadd.f32 %v868_v21, %v1083_v35 }
  0xe4   :  { %v441_v24 = vpop.f32.mrf.mxu0  ;;  %v569_v25 = vpop.f32.mrf.mxu1 }
  0xe5   :  { %663 = vst.msk [vmem:[%s1408_s3 + $0x70] sm:$0xff] %vm648_vm2, %v450_v22  ;;  %695 = vst.msk [vmem:[%s1408_s3 + $0x170] sm:$0xff] %vm648_vm2, %v578_v23  ;;  %v442_v26 = vadd.f32 %v1083_v35, %v441_v24  ;;  %v570_v27 = vadd.f32 %v1083_v35, %v569_v25 }
  0xe6   :  { %v837_v28 = vpop.f32.mrf.mxu0  ;;  %v869_v29 = vpop.f32.mrf.mxu1 }
  0xe7   :  { %661 = vst.msk [vmem:[%s1408_s3 + $0x60] sm:$0xff] %vm648_vm2, %v442_v26  ;;  %693 = vst.msk [vmem:[%s1408_s3 + $0x160] sm:$0xff] %vm648_vm2, %v570_v27  ;;  %v453_v30 = vadd.f32 %v837_v28, %v1083_v35  ;;  %v581_v31 = vadd.f32 %v869_v29, %v1083_v35 }
  0xe8   :  { %v444_v32 = vpop.f32.mrf.mxu0  ;;  %v572_v33 = vpop.f32.mrf.mxu1 }
  0xe9   :  { %664 = vst.msk [vmem:[%s1408_s3 + $0x78] sm:$0xff] %vm648_vm2, %v453_v30  ;;  %696 = vst.msk [vmem:[%s1408_s3 + $0x178] sm:$0xff] %vm648_vm2, %v581_v31  ;;  %v445_v34 = vadd.f32 %v1083_v35, %v444_v32  ;;  %v573_v36 = vadd.f32 %v1083_v35, %v572_v33 }
  0xea   :  { %v840_v37 = vpop.f32.mrf.mxu0  ;;  %v872_v38 = vpop.f32.mrf.mxu1 }
  0xeb   :  { %662 = vst.msk [vmem:[%s1408_s3 + $0x68] sm:$0xff] %vm648_vm2, %v445_v34  ;;  %694 = vst.msk [vmem:[%s1408_s3 + $0x168] sm:$0xff] %vm648_vm2, %v573_v36  ;;  %v466_v39 = vadd.f32 %v840_v37, %v1083_v35  ;;  %v594_v40 = vadd.f32 %v872_v38, %v1083_v35 }
  0xec   :  { %v457_v41 = vpop.f32.mrf.mxu0  ;;  %v585_v42 = vpop.f32.mrf.mxu1 }
  0xed   :  { %667 = vst.msk [vmem:[%s1408_s3 + $0x90] sm:$0xff] %vm648_vm2, %v466_v39  ;;  %699 = vst.msk [vmem:[%s1408_s3 + $0x190] sm:$0xff] %vm648_vm2, %v594_v40  ;;  %v458_v43 = vadd.f32 %v1083_v35, %v457_v41  ;;  %v586_v44 = vadd.f32 %v1083_v35, %v585_v42 }
  0xee   :  { %v841_v45 = vpop.f32.mrf.mxu0  ;;  %v873_v46 = vpop.f32.mrf.mxu1 }
  0xef   :  { %665 = vst.msk [vmem:[%s1408_s3 + $0x80] sm:$0xff] %vm648_vm2, %v458_v43  ;;  %697 = vst.msk [vmem:[%s1408_s3 + $0x180] sm:$0xff] %vm648_vm2, %v586_v44  ;;  %v469_v47 = vadd.f32 %v841_v45, %v1083_v35  ;;  %v597_v48 = vadd.f32 %v873_v46, %v1083_v35 }
  0xf0   :  { %v460_v49 = vpop.f32.mrf.mxu0  ;;  %v588_v50 = vpop.f32.mrf.mxu1 }
  0xf1   :  { %668 = vst.msk [vmem:[%s1408_s3 + $0x98] sm:$0xff] %vm648_vm2, %v469_v47  ;;  %700 = vst.msk [vmem:[%s1408_s3 + $0x198] sm:$0xff] %vm648_vm2, %v597_v48  ;;  %v461_v51 = vadd.f32 %v1083_v35, %v460_v49  ;;  %v589_v52 = vadd.f32 %v1083_v35, %v588_v50 }
  0xf2   :  { %v844_v53 = vpop.f32.mrf.mxu0  ;;  %v876_v54 = vpop.f32.mrf.mxu1 }
  0xf3   :  { %666 = vst.msk [vmem:[%s1408_s3 + $0x88] sm:$0xff] %vm648_vm2, %v461_v51  ;;  %698 = vst.msk [vmem:[%s1408_s3 + $0x188] sm:$0xff] %vm648_vm2, %v589_v52  ;;  %v482_v55 = vadd.f32 %v844_v53, %v1083_v35  ;;  %v610_v56 = vadd.f32 %v876_v54, %v1083_v35 }
  0xf4   :  { %v473_v57 = vpop.f32.mrf.mxu0  ;;  %v601_v58 = vpop.f32.mrf.mxu1 }
  0xf5   :  { %671 = vst.msk [vmem:[%s1408_s3 + $0xb0] sm:$0xff] %vm648_vm2, %v482_v55  ;;  %703 = vst.msk [vmem:[%s1408_s3 + $0x1b0] sm:$0xff] %vm648_vm2, %v610_v56  ;;  %v474_v59 = vadd.f32 %v1083_v35, %v473_v57  ;;  %v602_v60 = vadd.f32 %v1083_v35, %v601_v58 }
  0xf6   :  { %v845_v61 = vpop.f32.mrf.mxu0  ;;  %v877_v62 = vpop.f32.mrf.mxu1 }
  0xf7   :  { %669 = vst.msk [vmem:[%s1408_s3 + $0xa0] sm:$0xff] %vm648_vm2, %v474_v59  ;;  %701 = vst.msk [vmem:[%s1408_s3 + $0x1a0] sm:$0xff] %vm648_vm2, %v602_v60  ;;  %v485_v63 = vadd.f32 %v845_v61, %v1083_v35  ;;  %v613_v0 = vadd.f32 %v877_v62, %v1083_v35 }
  0xf8   :  { %v476_v1 = vpop.f32.mrf.mxu0  ;;  %v604_v2 = vpop.f32.mrf.mxu1 }
  0xf9   :  { %672 = vst.msk [vmem:[%s1408_s3 + $0xb8] sm:$0xff] %vm648_vm2, %v485_v63  ;;  %704 = vst.msk [vmem:[%s1408_s3 + $0x1b8] sm:$0xff] %vm648_vm2, %v613_v0  ;;  %v477_v3 = vadd.f32 %v1083_v35, %v476_v1  ;;  %v605_v4 = vadd.f32 %v1083_v35, %v604_v2 }
  0xfa   :  { %v848_v5 = vpop.f32.mrf.mxu0  ;;  %v880_v6 = vpop.f32.mrf.mxu1 }
  0xfb   :  { %670 = vst.msk [vmem:[%s1408_s3 + $0xa8] sm:$0xff] %vm648_vm2, %v477_v3  ;;  %702 = vst.msk [vmem:[%s1408_s3 + $0x1a8] sm:$0xff] %vm648_vm2, %v605_v4  ;;  %v498_v7 = vadd.f32 %v848_v5, %v1083_v35  ;;  %v626_v8 = vadd.f32 %v880_v6, %v1083_v35 }
  0xfc   :  { %v489_v9 = vpop.f32.mrf.mxu0  ;;  %v617_v10 = vpop.f32.mrf.mxu1 }
  0xfd   :  { %675 = vst.msk [vmem:[%s1408_s3 + $0xd0] sm:$0xff] %vm648_vm2, %v498_v7  ;;  %707 = vst.msk [vmem:[%s1408_s3 + $0x1d0] sm:$0xff] %vm648_vm2, %v626_v8  ;;  %v490_v11 = vadd.f32 %v1083_v35, %v489_v9  ;;  %v618_v12 = vadd.f32 %v1083_v35, %v617_v10 }
  0xfe   :  { %v849_v13 = vpop.f32.mrf.mxu0  ;;  %v881_v14 = vpop.f32.mrf.mxu1 }
  0xff   :  { %673 = vst.msk [vmem:[%s1408_s3 + $0xc0] sm:$0xff] %vm648_vm2, %v490_v11  ;;  %705 = vst.msk [vmem:[%s1408_s3 + $0x1c0] sm:$0xff] %vm648_vm2, %v618_v12  ;;  %v501_v15 = vadd.f32 %v849_v13, %v1083_v35  ;;  %v629_v16 = vadd.f32 %v881_v14, %v1083_v35 }
 0x100   :  { %v492_v17 = vpop.f32.mrf.mxu0  ;;  %v620_v18 = vpop.f32.mrf.mxu1 }
 0x101   :  { %676 = vst.msk [vmem:[%s1408_s3 + $0xd8] sm:$0xff] %vm648_vm2, %v501_v15  ;;  %708 = vst.msk [vmem:[%s1408_s3 + $0x1d8] sm:$0xff] %vm648_vm2, %v629_v16  ;;  %v493_v19 = vadd.f32 %v1083_v35, %v492_v17  ;;  %v621_v20 = vadd.f32 %v1083_v35, %v620_v18 }
 0x102   :  { %v852_v21 = vpop.f32.mrf.mxu0  ;;  %v884_v22 = vpop.f32.mrf.mxu1 }
 0x103   :  { %674 = vst.msk [vmem:[%s1408_s3 + $0xc8] sm:$0xff] %vm648_vm2, %v493_v19  ;;  %706 = vst.msk [vmem:[%s1408_s3 + $0x1c8] sm:$0xff] %vm648_vm2, %v621_v20  ;;  %v514_v23 = vadd.f32 %v852_v21, %v1083_v35  ;;  %v642_v24 = vadd.f32 %v884_v22, %v1083_v35 }
 0x104   :  { %v505_v25 = vpop.f32.mrf.mxu0  ;;  %v633_v26 = vpop.f32.mrf.mxu1 }
 0x105   :  { %679 = vst.msk [vmem:[%s1408_s3 + $0xf0] sm:$0xff] %vm648_vm2, %v514_v23  ;;  %711 = vst.msk [vmem:[%s1408_s3 + $0x1f0] sm:$0xff] %vm648_vm2, %v642_v24  ;;  %v506_v27 = vadd.f32 %v1083_v35, %v505_v25  ;;  %v634_v28 = vadd.f32 %v1083_v35, %v633_v26 }
 0x106   :  { %v853_v29 = vpop.f32.mrf.mxu0  ;;  %v885_v30 = vpop.f32.mrf.mxu1 }
 0x107   :  { %677 = vst.msk [vmem:[%s1408_s3 + $0xe0] sm:$0xff] %vm648_vm2, %v506_v27  ;;  %709 = vst.msk [vmem:[%s1408_s3 + $0x1e0] sm:$0xff] %vm648_vm2, %v634_v28  ;;  %v517_v31 = vadd.f32 %v853_v29, %v1083_v35  ;;  %v645_v32 = vadd.f32 %v885_v30, %v1083_v35 }
 0x108   :  { %v508_v33 = vpop.f32.mrf.mxu0  ;;  %v636_v34 = vpop.f32.mrf.mxu1 }
 0x109   :  { %680 = vst.msk [vmem:[%s1408_s3 + $0xf8] sm:$0xff] %vm648_vm2, %v517_v31  ;;  %712 = vst.msk [vmem:[%s1408_s3 + $0x1f8] sm:$0xff] %vm648_vm2, %v645_v32  ;;  %v509_v36 = vadd.f32 %v1083_v35, %v508_v33  ;;  %v637_v37 = vadd.f32 %v1083_v35, %v636_v34 }
 0x10b   :  { %678 = vst.msk [vmem:[%s1408_s3 + $0xe8] sm:$0xff] %vm648_vm2, %v509_v36  ;;  %710 = vst.msk [vmem:[%s1408_s3 + $0x1e8] sm:$0xff] %vm648_vm2, %v637_v37 }

</bundles_post_ra>
